<compile_context>
chip_gen: v5e
topology: v5e:2x2
jax: 0.10.0
libtpu: 0.0.40
codegen_flags: <defaults>
</compile_context>

<pallas_src>
import functools
import math

import jax
import jax.numpy as jnp
from jax import lax
from jax.experimental import pallas as pl
from jax.experimental.pallas import tpu as pltpu


# tap offsets (dh, dw) = (kh - 1, kw - 1), tap index t = kh * 3 + kw
_TAPS = tuple((dh, dw) for dh in (-1, 0, 1) for dw in (-1, 0, 1))


@functools.lru_cache(maxsize=None)
def _roll_matches_jnp():
    """pltpu.roll is documented to follow jnp.roll; probe the rotate direction
    once on-device so a flipped convention cannot silently corrupt the conv."""
    def probe(x_ref, o_ref):
        o_ref[...] = pltpu.roll(x_ref[...], shift=1, axis=1)

    x = jnp.broadcast_to(jnp.arange(128, dtype=jnp.float32)[None, :], (8, 128))
    out = pl.pallas_call(
        probe, out_shape=jax.ShapeDtypeStruct((8, 128), jnp.float32))(x)
    return bool(float(out[0, 0]) == 127.0)  # jnp.roll(x, 1)[..., 0] == x[..., -1]


def _shift(a, off, axis, size, roll_like_jnp):
    """result[..., i, ...] = a[..., (i + off) % size, ...]  (wrap; masked later)."""
    s = (-off) % size
    if s == 0:
        return a
    if not roll_like_jnp:
        s = size - s
    return pltpu.roll(a, shift=s, axis=axis)


# --------------------------------------------------------------------------- #
# Fused block kernel                                                           #
# --------------------------------------------------------------------------- #
def _make_block_kernel(*, stride, in_planes, planes, wo, mout, roll_like_jnp):
    identity_shortcut = (stride == 1 and in_planes == planes)

    def im2col(a, m_ref):
        """(C, mout) f32 activation -> (9*C, mout) bf16 im2col via rolls + masks."""
        cols = []
        for t, (dh, dw) in enumerate(_TAPS):
            off = dh * wo + dw
            if off == 0:
                cols.append(a)
            else:
                tap = _shift(a, off, axis=1, size=mout,
                             roll_like_jnp=roll_like_jnp)
                cols.append(tap * m_ref[pl.ds(t, 1), :])
        return jnp.concatenate(cols, axis=0).astype(jnp.bfloat16)

    def kernel(x1_ref, w1_ref, w2_ref, s1_ref, b1_ref, s2_ref, b2_ref, m_ref,
               o_ref):
        # ---- conv1 + BN1 + ReLU (bf16 MXU operands, f32 accumulate/epilogue) --
        if stride == 1:
            xcol1 = im2col(x1_ref[...], m_ref)        # in-kernel im2col
        else:
            xcol1 = x1_ref[...].astype(jnp.bfloat16)  # wrapper strided im2col
        a1 = jnp.dot(w1_ref[...], xcol1, preferred_element_type=jnp.float32)
        a1 = jnp.maximum(a1 * s1_ref[...] + b1_ref[...], 0.0)

        # ---- conv2 + BN2 (intermediate a1 never leaves VMEM) -----------------
        a2 = jnp.dot(w2_ref[...], im2col(a1, m_ref),
                     preferred_element_type=jnp.float32)
        a2 = a2 * s2_ref[...] + b2_ref[...]

        # ---- shortcut + final ReLU -------------------------------------------
        if identity_shortcut:
            a2 = a2 + x1_ref[...]
        else:
            # LambdaLayer: x[:, :, ::2, ::2] == centre tap (t = 4) of the strided
            # im2col; zero-pad planes//4 channels on each side in-register.
            sc = x1_ref[pl.ds(4 * in_planes, in_planes), :]
            pad_lo = planes // 4
            sc = jnp.concatenate(
                [sc, jnp.zeros((planes - in_planes, mout), jnp.float32)], axis=0)
            sc = _shift(sc, -pad_lo, axis=0, size=planes,
                        roll_like_jnp=roll_like_jnp)
            a2 = a2 + sc
        o_ref[...] = jnp.maximum(a2, 0.0)

    return kernel


# --------------------------------------------------------------------------- #
# Wrapper                                                                      #
# --------------------------------------------------------------------------- #
def _fold_bn(bn, eps=1e-5):
    scale = bn["gamma"] * lax.rsqrt(bn["var"] + eps)
    return scale, bn["beta"] - bn["mean"] * scale


def _tap_masks(n, ho, wo):
    oh = jnp.arange(ho)[:, None]
    ow = jnp.arange(wo)[None, :]
    rows = []
    for dh, dw in _TAPS:
        valid = ((oh + dh >= 0) & (oh + dh < ho) &
                 (ow + dw >= 0) & (ow + dw < wo))
        rows.append(jnp.tile(valid.astype(jnp.float32).reshape(-1), n))
    return jnp.stack(rows, axis=0)                      # (9, n*ho*wo)


def basic_block_cifar(x_nchw, params, *, in_planes, planes, stride=1):
    """BasicBlockcifar forward (eval-mode BN), NCHW in / NCHW out."""
    n, cin, h, w = x_nchw.shape
    if cin != in_planes:
        raise ValueError("channel mismatch")
    if stride == 1 and in_planes != planes:
        raise NotImplementedError("shape-inconsistent config in the reference module")
    if stride != 1 and (stride != 2 or in_planes + 2 * (planes // 4) != planes):
        raise NotImplementedError("shortcut supports stride=2 with planes=2*in_planes")

    ho = (h + 2 - 3) // stride + 1
    wo = (w + 2 - 3) // stride + 1
    mout = n * ho * wo

    # channels-major activations: lanes = flattened (batch, spatial)
    xt = jnp.transpose(x_nchw, (1, 0, 2, 3)).astype(jnp.float32)  # (Cin, N, H, W)
    if stride == 1:
        x1 = xt.reshape(cin, mout)
    else:
        # strided taps cannot be expressed as lane rolls -> wrapper im2col here
        xp = jnp.pad(xt, ((0, 0), (0, 0), (1, 1), (1, 1)))
        cols = [xp[:, :, kh: kh + (ho - 1) * stride + 1: stride,
                       kw: kw + (wo - 1) * stride + 1: stride].reshape(cin, mout)
                for kh in range(3) for kw in range(3)]
        x1 = jnp.concatenate(cols, axis=0)                        # (9*Cin, mout)

    # weights: HWIO -> (Cout, 9*Cin), column = (kh*3+kw)*Cin + ci; bf16 for MXU
    w1b = params["w1"].reshape(9 * in_planes, planes).T.astype(jnp.bfloat16)
    w2b = params["w2"].reshape(9 * planes, planes).T.astype(jnp.bfloat16)

    s1, b1 = _fold_bn(params["bn1"])
    s2, b2 = _fold_bn(params["bn2"])
    s1 = s1.reshape(planes, 1).astype(jnp.float32)
    b1 = b1.reshape(planes, 1).astype(jnp.float32)
    s2 = s2.reshape(planes, 1).astype(jnp.float32)
    b2 = b2.reshape(planes, 1).astype(jnp.float32)

    masks = _tap_masks(n, ho, wo)                                 # (9, mout)

    kernel = _make_block_kernel(stride=stride, in_planes=in_planes,
                                planes=planes, wo=wo, mout=mout,
                                roll_like_jnp=_roll_matches_jnp())

    operands = (x1, w1b, w2b, s1, b1, s2, b2, masks)
    flops = 2 * mout * 9 * in_planes * planes + 2 * mout * 9 * planes * planes
    bytes_accessed = sum(int(a.size) * a.dtype.itemsize for a in operands)
    bytes_accessed += mout * planes * 4
    vmem = pl.BlockSpec(memory_space=pltpu.MemorySpace.VMEM)

    out = pl.pallas_call(
        kernel,
        out_shape=jax.ShapeDtypeStruct((planes, mout), jnp.float32),
        in_specs=[vmem] * len(operands),
        out_specs=vmem,
        cost_estimate=pl.CostEstimate(flops=flops, transcendentals=0,
                                      bytes_accessed=bytes_accessed),
    )(*operands)

    return out.reshape(planes, n, ho, wo).transpose(1, 0, 2, 3)   # -> NCHW


# --------------------------------------------------------------------------- #
# Deterministic parameter init + pure-JAX references                           #
# --------------------------------------------------------------------------- #
def init_params(key, in_planes, planes):
    k1, k2 = jax.random.split(key)
    w1 = jax.random.normal(k1, (3, 3, in_planes, planes),
                           jnp.float32) / math.sqrt(9 * in_planes)
    w2 = jax.random.normal(k2, (3, 3, planes, planes),
                           jnp.float32) / math.sqrt(9 * planes)
    c = jnp.arange(planes, dtype=jnp.float32)
    bn1 = dict(gamma=1.0 + 0.1 * jnp.cos(c), beta=0.05 * jnp.sin(c),
               mean=0.01 * c, var=1.0 + 0.02 * c)
    bn2 = dict(gamma=1.0 - 0.05 * jnp.sin(c), beta=0.02 * jnp.cos(c),
               mean=-0.01 * c, var=1.0 + 0.03 * c)
    return dict(w1=w1, w2=w2, bn1=bn1, bn2=bn2)


def ref_forward(x_nchw, params, *, in_planes, planes, stride,
                op_dtype=jnp.float32, precision=None):
    """Pure-JAX reference. op_dtype=bfloat16 mirrors the kernel's MXU numerics."""
    x = jnp.transpose(x_nchw, (0, 2, 3, 1)).astype(jnp.float32)   # NHWC

    def conv(inp, wgt, s):
        return lax.conv_general_dilated(
            inp.astype(op_dtype), wgt.astype(op_dtype), (s, s), ((1, 1), (1, 1)),
            dimension_numbers=("NHWC", "HWIO", "NHWC"),
            preferred_element_type=jnp.float32, precision=precision)

    s1, b1 = _fold_bn(params["bn1"])
    s2, b2 = _fold_bn(params["bn2"])
    h = jax.nn.relu(conv(x, params["w1"], stride) * s1 + b1)
    h = conv(h, params["w2"], 1) * s2 + b2
    if stride != 1 or in_planes != planes:
        p = planes // 4
        sc = jnp.pad(x[:, ::2, ::2, :], ((0, 0), (0, 0), (0, 0), (p, p)))
    else:
        sc = x
    out = jax.nn.relu(h + sc)
    return jnp.transpose(out, (0, 3, 1, 2))


# --------------------------------------------------------------------------- #
if __name__ == "__main__":
    key = jax.random.PRNGKey(0)
    kx, kp1, kp2 = jax.random.split(key, 3)

    N, C, H, W = 2, 8, 16, 16
    x = jax.random.normal(kx, (N, C, H, W), jnp.float32)

    # 1) identity shortcut: stride=1, in_planes == planes
    p1 = init_params(kp1, 8, 8)
    y1 = basic_block_cifar(x, p1, in_planes=8, planes=8, stride=1)

    # 2) downsampling shortcut: stride=2, planes == 2 * in_planes
    p2 = init_params(kp2, 8, 16)
    y2 = basic_block_cifar(x, p2, in_planes=8, planes=16, stride=2)

    jax.block_until_ready((y1, y2))
    assert y1.shape == (2, 8, 16, 16), y1.shape
    assert y2.shape == (2, 16, 8, 8), y2.shape

    for y, p, ip, outp, st in ((y1, p1, 8, 8, 1), (y2, p2, 8, 16, 2)):
        r_bf16 = ref_forward(x, p, in_planes=ip, planes=outp, stride=st,
                             op_dtype=jnp.bfloat16)
        r_f32 = ref_forward(x, p, in_planes=ip, planes=outp, stride=st,
                            op_dtype=jnp.float32,
                            precision=lax.Precision.HIGHEST)
        # tight check vs a reference that mirrors the bf16-operand MXU numerics
        assert jnp.allclose(y, r_bf16, atol=1e-2, rtol=1e-2), \
            float(jnp.max(jnp.abs(y - r_bf16)))
        # looser sanity check vs the full-f32 module semantics
        assert jnp.allclose(y, r_f32, atol=5e-2, rtol=5e-2), \
            float(jnp.max(jnp.abs(y - r_f32)))

    print("KERNEL_OK")
</pallas_src>

<mosaic_0001>
module attributes {stable_mosaic.version = 11 : i64} {
  func.func @probe(%arg0: memref<8x128xf32, #tpu.memory_space<vmem>>, %arg1: memref<8x128xf32, #tpu.memory_space<vmem>>) attributes {dimension_semantics = [], scalar_prefetch = 0 : i64, scratch_operands = 0 : i64, tpu.core_type = #tpu.core_type<tc>} {
    %c0 = arith.constant 0 : index
    %c0_0 = arith.constant 0 : index
    %0 = vector.load %arg0[%c0, %c0_0] : memref<8x128xf32, #tpu.memory_space<vmem>>, vector<8x128xf32>
    %c1_i32 = arith.constant 1 : i32
    %1 = tpu.dynamic_rotate %0 by %c1_i32 dim 1 : vector<8x128xf32>, i32 -> vector<8x128xf32>
    %c0_1 = arith.constant 0 : index
    %c0_2 = arith.constant 0 : index
    %2 = vector.load %arg1[%c0_1, %c0_2] : memref<8x128xf32, #tpu.memory_space<vmem>>, vector<8x128xf32>
    tpu.vector_store %arg1[%c0_1, %c0_2], %1 {strides = array<i32>} : memref<8x128xf32, #tpu.memory_space<vmem>>, vector<8x128xf32>,
    return
  }
}

</mosaic_0001>

<bundles_post_ra>
// kernel: tpu_custom_call.1
= control target key start
LH: loop header
LB: loop body
LE: loop exit
PB: predicated region body
PF: predicated region fallthrough
CT: control target
= control target key end

     0   :  { %6 = vsyncpa [#allocation3], 0  ;;  %s118_s0 = inlined_call_operand.hbm [shape: f32[8,128], index: 0, kind: input, shape index: {}]   ;;  %s119_s1 = inlined_call_operand.hbm [shape: f32[8,128], index: 1, kind: output, shape index: {}]  }
   0x1   :  { %7 = vsyncpa [#allocation4], 0  ;;  %s13_s8 = sshll.u32 %s118_s0, 4  ;;  %s99_s9 = smov [#allocation2]   ;;  %s14_s8 = int_to_ptr.hbm [resolvable:$true] %s13_s8 }
   0x2   :  { %s15_s10 = sshll.u32 %s99_s9, 4  ;;  %s16_s10 = int_to_ptr.vmem [resolvable:$true] %s15_s10 }
   0x3   :  { %18 = dma.hbm_to_vmem [thread:$0]  %s14_s8, 128, %s16_s10, [#allocation3]  }
   0x4   :  { %95 = dma.done.wait [#allocation3], 128  }
   0x5   :  { %96 = vsyncadd [#allocation3], 4294967168  ;;  %v23_v0 = vld [vmem:[#allocation2] sm:$0xff]  ;;  %s100_s11 = smov 1   ;;  %s101_s12 = smov [#allocation5]  }
   0x6   :  { %24 = vrot.lane.b32.xlu0 %v23_v0, %s100_s11  ;;  %s32_s13 = sshll.u32 %s101_s12, 4  ;;  %s34_s16 = sshll.u32 %s119_s1, 4  ;;  %s33_s13 = int_to_ptr.vmem [resolvable:$true] %s32_s13  ;;  %s35_s16 = int_to_ptr.hbm [resolvable:$true] %s34_s16 }
  0x78   :  { %v25_v1 = vpop.permute.xlu0 %24 }
  0x79   :  { %26 = vst [vmem:[#allocation5] sm:$0xff] %v25_v1 }
  0x7a   :  { %37 = dma.vmem_to_hbm [thread:$0]  %s33_s13, 128, %s35_s16, [#allocation4]  }
  0x7b   :  { %97 = dma.done.wait [#allocation4], 128  }
  0x7c   :  { %98 = vsyncadd [#allocation4], 4294967168 }
  0x7d   :  { %42 = vsyncpa [#allocation3], 1 }
  0x7e   :  { %43 = vsyncpa [#allocation4], 1 }

</bundles_post_ra>
